<compile_context>
chip_gen: v7x
topology: tpu7x:2x2x1
jax: 0.10.0
libtpu: 0.0.40
codegen_flags: <defaults>
</compile_context>

<pallas_src>
import jax
import jax.numpy as jnp
from jax import lax
from jax.experimental import pallas as pl
from jax.experimental.pallas import tpu as pltpu


def _tpu_generation():
    """Best-effort TPU generation detection for per-chip tile/VMEM budgets."""
    try:
        kind = jax.devices()[0].device_kind.lower()
    except Exception:
        kind = ""
    if "v7" in kind:
        return "v7x"
    if "v6" in kind or "trillium" in kind:
        return "v6e"
    if "v5" in kind:
        return "v5e"
    return "other"


# num_tc: TensorCores to split the batch reduction over.
# per_buf: per-pipeline-buffer budget for the x tile, in f32-equivalent bytes
#          (covers the in-kernel f32 temporaries for sub-32-bit inputs).
# vmem_limit: scoped VMEM limit handed to Mosaic.
_GEN_CONFIG = {
    # v7x: 2 TCs but only 64 MiB VMEM per TC -> modest tiles, 2-way batch split.
    "v7x": dict(num_tc=2, per_buf=10 * 1024 * 1024, vmem_limit=46 * 1024 * 1024),
    # v6e / v5e: single TC, 128 MiB VMEM -> big double-buffered tiles.
    "v6e": dict(num_tc=1, per_buf=20 * 1024 * 1024, vmem_limit=96 * 1024 * 1024),
    "v5e": dict(num_tc=1, per_buf=20 * 1024 * 1024, vmem_limit=96 * 1024 * 1024),
    # Unknown chip: previously validated conservative numbers.
    "other": dict(num_tc=1, per_buf=8 * 1024 * 1024, vmem_limit=32 * 1024 * 1024),
}


def _make_kernel(*, batch, tb, td, acc_rows, tiles_per_split, num_splits,
                 mask_rows, mask_cols, feat):
    inv_batch = 1.0 / batch
    inv_splits = 1.0 / num_splits

    def fold_rows(xv):
        # (tb, td) -> (acc_rows, td) partial column-sums: pure VPU vadds
        # (the leading reshape axis is the un-tiled dim, no XLU traffic).
        xf = xv.astype(jnp.float32)
        if tb == acc_rows:
            return xf
        return jnp.sum(xf.reshape(tb // acc_rows, acc_rows, td), axis=0)

    def kernel(x_ref, w_ref, b_ref, out_ref, acc_col_ref, acc_sum_ref):
        # x_ref   : (tb, td)  tile of flattened fakes (VMEM, double-buffered)
        # w_ref   : (1, td)   discriminator weight slice (VMEM)
        # b_ref   : (1,)      discriminator bias (SMEM)
        # out_ref : (8, 128)  this split's lane-dense partial-loss block
        # acc_col : (acc_rows, td) f32 running batch column-sum of x
        # acc_sum : (1, 1)    f32 running sum of x . w for this split
        c = pl.program_id(0)   # TensorCore split (CORE_PARALLEL on v7x)
        dt = pl.program_id(1)  # feature (D) block
        j = pl.program_id(2)   # batch tile within the split (innermost)
        n_d = pl.num_programs(1)
        n_j = pl.num_programs(2)

        @pl.when(jnp.logical_and(dt == 0, j == 0))
        def _init_total():
            acc_sum_ref[...] = jnp.zeros_like(acc_sum_ref)

        @pl.when(j == 0)
        def _init_cols():
            acc_col_ref[...] = jnp.zeros_like(acc_col_ref)

        x = x_ref[...]
        if mask_rows:
            # Ragged tail / ghost tiles handled in-kernel: no wrapper-side pad.
            row_start = (c * tiles_per_split + j) * tb
            rows_valid = batch - row_start  # may be <= 0 for ghost tiles

            @pl.when(rows_valid >= tb)       # interior tile: plain adds
            def _full():
                acc_col_ref[...] += fold_rows(x)

            @pl.when(rows_valid < tb)        # boundary tile: zero invalid rows
            def _ragged():
                rows = lax.broadcasted_iota(jnp.int32, (tb, 1), 0)
                xm = jnp.where(rows < rows_valid, x, jnp.zeros_like(x))
                acc_col_ref[...] += fold_rows(xm)
        else:
            acc_col_ref[...] += fold_rows(x)

        # Finished streaming this (split, feature-block): fold with w once.
        @pl.when(j == n_j - 1)
        def _fold_features():
            wf = w_ref[...].astype(jnp.float32)        # (1, td)
            prod = acc_col_ref[...] * wf               # (acc_rows, td)
            if mask_cols:
                cols = lax.broadcasted_iota(jnp.int32, (1, td), 1)
                prod = jnp.where(cols < feat - dt * td, prod, 0.0)
            acc_sum_ref[...] += jnp.sum(prod)

        @pl.when(jnp.logical_and(dt == n_d - 1, j == n_j - 1))
        def _finalize():
            # Per-split contribution to mean(-(x @ w + b)); bias applied exactly
            # once in total across the splits.
            contrib = -(acc_sum_ref[...] * inv_batch) - b_ref[0] * inv_splits
            out_ref[...] = jnp.broadcast_to(contrib, out_ref.shape)

    return kernel


def wgan_gp_generator_loss(fakes, reals, disc_w, disc_b):
    """loss = (-discriminator(fakes)).mean(); `reals` is unused (matches PyTorch)."""
    del reals  # unused, kept for signature parity with the torch module
    B = fakes.shape[0]
    x = fakes.reshape(B, -1)          # (B, D), D = C*H*W (metadata-only reshape)
    D = x.shape[1]
    w_row = disc_w.reshape(1, D)      # lane-dense (1, D) weight

    cfg = _GEN_CONFIG[_tpu_generation()]
    per_buf = cfg["per_buf"]

    itemsize = jnp.dtype(x.dtype).itemsize
    sub_min = max(8, 32 // max(1, itemsize))   # sublane tile: 8 f32 / 16 bf16 / 32 i8

    # ---- feature (lane) axis tiling: only when a minimal (sub_min, D) block
    # would blow the per-buffer budget (very large D). ----
    if D * 4 * sub_min <= per_buf:
        td, num_d_tiles = D, 1
    else:
        td = max(128, (per_buf // (sub_min * 4)) // 128 * 128)
        num_d_tiles = -(-D // td)
    mask_cols = (num_d_tiles * td != D)

    # ---- batch (sublane) axis tiling: biggest tile that fits the budget. ----
    rows_fit = per_buf // (td * 4)
    if rows_fit >= B:
        tb = B                                  # whole batch dim in one block
    else:
        tb = max(sub_min, (rows_fit // sub_min) * sub_min)

    total_b_tiles = -(-B // tb)
    num_splits = cfg["num_tc"] if total_b_tiles >= cfg["num_tc"] else 1
    tiles_per_split = -(-total_b_tiles // num_splits)
    mask_rows = (num_splits * tiles_per_split * tb != B)
    clamp = (num_splits * tiles_per_split != total_b_tiles)  # "ghost" tiles exist

    acc_rows = 8 if tb % 8 == 0 else tb

    if clamp:
        last_blk = total_b_tiles - 1

        def x_map(c, dt, j):
            return (jnp.minimum(c * tiles_per_split + j, last_blk), dt)
    else:
        def x_map(c, dt, j):
            return (c * tiles_per_split + j, dt)

    kernel = _make_kernel(
        batch=B, tb=tb, td=td, acc_rows=acc_rows,
        tiles_per_split=tiles_per_split, num_splits=num_splits,
        mask_rows=mask_rows, mask_cols=mask_cols, feat=D,
    )

    grid_spec = pltpu.PrefetchScalarGridSpec(
        num_scalar_prefetch=0,
        grid=(num_splits, num_d_tiles, tiles_per_split),
        in_specs=[
            pl.BlockSpec((tb, td), x_map),
            pl.BlockSpec((1, td), lambda c, dt, j: (0, dt)),   # weight slice
            pl.BlockSpec(memory_space=pltpu.SMEM),             # bias scalar
        ],
        out_specs=pl.BlockSpec((8, 128), lambda c, dt, j: (c, 0)),
        scratch_shapes=[
            pltpu.VMEM((acc_rows, td), jnp.float32),   # batch column-sum accumulator
            pltpu.VMEM((1, 1), jnp.float32),           # per-split x.w accumulator
        ],
    )

    lead_sem = pltpu.CORE_PARALLEL if num_splits > 1 else pltpu.ARBITRARY
    out = pl.pallas_call(
        kernel,
        out_shape=jax.ShapeDtypeStruct((num_splits * 8, 128), jnp.float32),
        grid_spec=grid_spec,
        compiler_params=pltpu.CompilerParams(
            dimension_semantics=(lead_sem, pltpu.ARBITRARY, pltpu.ARBITRARY),
            vmem_limit_bytes=cfg["vmem_limit"],
        ),
        cost_estimate=pl.CostEstimate(
            flops=2 * B * D,
            transcendentals=0,
            bytes_accessed=(
                B * D * itemsize
                + D * jnp.dtype(disc_w.dtype).itemsize
                + num_splits * 8 * 128 * 4
            ),
        ),
    )(x, w_row, disc_b)

    # Each split broadcast its contribution over its (8,128) block; pick row 0
    # of each block and sum the (tiny) per-split contributions.
    return jnp.sum(out[::8, 0])


if __name__ == "__main__":
    key = jax.random.PRNGKey(0)
    k_f, k_r, k_w = jax.random.split(key, 3)

    B, C, H, W = 2, 4, 16, 16
    D = C * H * W

    fakes = jax.random.normal(k_f, (B, C, H, W), dtype=jnp.float32)
    reals = jax.random.normal(k_r, (B, C, H, W), dtype=jnp.float32)

    # Deterministic discriminator parameters (Linear D -> 1).
    disc_w = jax.random.normal(k_w, (D, 1), dtype=jnp.float32) * 0.02
    disc_b = jnp.full((1,), 0.1, dtype=jnp.float32)

    loss = wgan_gp_generator_loss(fakes, reals, disc_w, disc_b)
    loss = jax.block_until_ready(loss)

    # Reference check in plain JAX.
    ref = jnp.mean(-(fakes.reshape(B, -1) @ disc_w + disc_b[0]))
    assert jnp.allclose(loss, ref, atol=1e-5, rtol=1e-5), (loss, ref)

    print("KERNEL_OK")
</pallas_src>

<mosaic_0001>
module attributes {stable_mosaic.version = 11 : i64} {
  func.func @kernel(%arg0: i32, %arg1: i32, %arg2: i32, %arg3: memref<2x1024xf32, #tpu.memory_space<vmem>>, %arg4: memref<1x1024xf32, #tpu.memory_space<vmem>>, %arg5: memref<1xf32, #tpu.memory_space<smem>>, %arg6: memref<8x128xf32, #tpu.memory_space<vmem>>, %arg7: memref<2x1024xf32, #tpu.memory_space<vmem>>, %arg8: memref<1x1xf32, #tpu.memory_space<vmem>>) attributes {dimension_semantics = [#tpu.dimension_semantics<arbitrary>, #tpu.dimension_semantics<arbitrary>, #tpu.dimension_semantics<arbitrary>], iteration_bounds = array<i64: 1, 1, 1>, scalar_prefetch = 0 : i64, scratch_operands = 2 : i64, tpu.core_type = #tpu.core_type<tc>, window_params = [{transform_indices = @transform_0, window_bounds = array<i64: 2, 1024>}, {transform_indices = @transform_1, window_bounds = array<i64: 1, 1024>}, {transform_indices = @transform_2, window_bounds = array<i64: 1>}, {transform_indices = @transform_3, window_bounds = array<i64: 8, 128>}]} {
    %c0_i32 = arith.constant 0 : i32
    %0 = arith.cmpi eq, %arg1, %c0_i32 : i32
    %c0_i32_0 = arith.constant 0 : i32
    %1 = arith.cmpi eq, %arg2, %c0_i32_0 : i32
    %2 = arith.andi %0, %1 : i1
    %3 = arith.extui %2 : i1 to i32
    %c0_i32_1 = arith.constant 0 : i32
    %4 = arith.cmpi ne, %3, %c0_i32_1 : i32
    scf.if %4 {
      %cst = arith.constant 0.000000e+00 : f32
      %20 = vector.broadcast %cst : f32 to vector<1x1xf32>
      %c0_14 = arith.constant 0 : index
      %c0_15 = arith.constant 0 : index
      %21 = vector.load %arg8[%c0_14, %c0_15] : memref<1x1xf32, #tpu.memory_space<vmem>>, vector<1x1xf32>
      tpu.vector_store %arg8[%c0_14, %c0_15], %20 {strides = array<i32>} : memref<1x1xf32, #tpu.memory_space<vmem>>, vector<1x1xf32>,
    } else {
    }
    %c0_i32_2 = arith.constant 0 : i32
    %5 = arith.cmpi eq, %arg2, %c0_i32_2 : i32
    %6 = arith.extui %5 : i1 to i32
    %c0_i32_3 = arith.constant 0 : i32
    %7 = arith.cmpi ne, %6, %c0_i32_3 : i32
    scf.if %7 {
      %cst = arith.constant 0.000000e+00 : f32
      %20 = vector.broadcast %cst : f32 to vector<2x1024xf32>
      %c0_14 = arith.constant 0 : index
      %c0_15 = arith.constant 0 : index
      %21 = vector.load %arg7[%c0_14, %c0_15] : memref<2x1024xf32, #tpu.memory_space<vmem>>, vector<2x1024xf32>
      tpu.vector_store %arg7[%c0_14, %c0_15], %20 {strides = array<i32>} : memref<2x1024xf32, #tpu.memory_space<vmem>>, vector<2x1024xf32>,
    } else {
    }
    %c0 = arith.constant 0 : index
    %c0_4 = arith.constant 0 : index
    %8 = vector.load %arg3[%c0, %c0_4] : memref<2x1024xf32, #tpu.memory_space<vmem>>, vector<2x1024xf32>
    %c0_5 = arith.constant 0 : index
    %c0_6 = arith.constant 0 : index
    %9 = vector.load %arg7[%c0_5, %c0_6] : memref<2x1024xf32, #tpu.memory_space<vmem>>, vector<2x1024xf32>
    %10 = arith.addf %9, %8 : vector<2x1024xf32>
    %c0_7 = arith.constant 0 : index
    %c0_8 = arith.constant 0 : index
    %11 = vector.load %arg7[%c0_7, %c0_8] : memref<2x1024xf32, #tpu.memory_space<vmem>>, vector<2x1024xf32>
    tpu.vector_store %arg7[%c0_7, %c0_8], %10 {strides = array<i32>} : memref<2x1024xf32, #tpu.memory_space<vmem>>, vector<2x1024xf32>,
    %c0_i32_9 = arith.constant 0 : i32
    %12 = arith.cmpi eq, %arg2, %c0_i32_9 : i32
    %13 = arith.extui %12 : i1 to i32
    %c0_i32_10 = arith.constant 0 : i32
    %14 = arith.cmpi ne, %13, %c0_i32_10 : i32
    scf.if %14 {
      %c0_14 = arith.constant 0 : index
      %c0_15 = arith.constant 0 : index
      %20 = vector.load %arg4[%c0_14, %c0_15] : memref<1x1024xf32, #tpu.memory_space<vmem>>, vector<1x1024xf32>
      %c0_16 = arith.constant 0 : index
      %c0_17 = arith.constant 0 : index
      %21 = vector.load %arg7[%c0_16, %c0_17] : memref<2x1024xf32, #tpu.memory_space<vmem>>, vector<2x1024xf32>
      %22 = vector.broadcast %20 : vector<1x1024xf32> to vector<2x1024xf32>
      %23 = arith.mulf %21, %22 : vector<2x1024xf32>
      %c0_18 = arith.constant 0 : index
      %c0_19 = arith.constant 0 : index
      %24 = vector.load %arg8[%c0_18, %c0_19] : memref<1x1xf32, #tpu.memory_space<vmem>>, vector<1x1xf32>
      %25 = vector.shape_cast %23 : vector<2x1024xf32> to vector<1x2x1024xf32>
      %cst = arith.constant dense<0.000000e+00> : vector<1xf32>
      %26 = vector.multi_reduction <add>, %25, %cst [1, 2] : vector<1x2x1024xf32> to vector<1xf32>
      %27 = vector.shape_cast %26 : vector<1xf32> to vector<1x1x1xf32>
      %28 = vector.extract %27[0, 0, 0] : f32 from vector<1x1x1xf32>
      %29 = vector.broadcast %28 : f32 to vector<1x1xf32>
      %30 = arith.addf %24, %29 : vector<1x1xf32>
      %c0_20 = arith.constant 0 : index
      %c0_21 = arith.constant 0 : index
      %31 = vector.load %arg8[%c0_20, %c0_21] : memref<1x1xf32, #tpu.memory_space<vmem>>, vector<1x1xf32>
      tpu.vector_store %arg8[%c0_20, %c0_21], %30 {strides = array<i32>} : memref<1x1xf32, #tpu.memory_space<vmem>>, vector<1x1xf32>,
    } else {
    }
    %c0_i32_11 = arith.constant 0 : i32
    %15 = arith.cmpi eq, %arg1, %c0_i32_11 : i32
    %c0_i32_12 = arith.constant 0 : i32
    %16 = arith.cmpi eq, %arg2, %c0_i32_12 : i32
    %17 = arith.andi %15, %16 : i1
    %18 = arith.extui %17 : i1 to i32
    %c0_i32_13 = arith.constant 0 : i32
    %19 = arith.cmpi ne, %18, %c0_i32_13 : i32
    scf.if %19 {
      %c0_14 = arith.constant 0 : index
      %c0_15 = arith.constant 0 : index
      %20 = vector.load %arg8[%c0_14, %c0_15] : memref<1x1xf32, #tpu.memory_space<vmem>>, vector<1x1xf32>
      %cst = arith.constant 5.000000e-01 : f32
      %21 = vector.broadcast %cst : f32 to vector<1x1xf32>
      %22 = arith.mulf %20, %21 : vector<1x1xf32>
      %cst_16 = arith.constant 0.000000e+00 : f32
      %23 = vector.broadcast %cst_16 : f32 to vector<1x1xf32>
      %24 = arith.subf %23, %22 : vector<1x1xf32>
      %c0_17 = arith.constant 0 : index
      %25 = memref.load %arg5[%c0_17] : memref<1xf32, #tpu.memory_space<smem>>
      %cst_18 = arith.constant 1.000000e+00 : f32
      %26 = arith.mulf %25, %cst_18 : f32
      %27 = vector.broadcast %26 : f32 to vector<1x1xf32>
      %28 = arith.subf %24, %27 : vector<1x1xf32>
      %29 = vector.shape_cast %28 : vector<1x1xf32> to vector<1x1xf32>
      %30 = vector.broadcast %29 : vector<1x1xf32> to vector<8x128xf32>
      %c0_19 = arith.constant 0 : index
      %c0_20 = arith.constant 0 : index
      %31 = vector.load %arg6[%c0_19, %c0_20] : memref<8x128xf32, #tpu.memory_space<vmem>>, vector<8x128xf32>
      tpu.vector_store %arg6[%c0_19, %c0_20], %30 {strides = array<i32>} : memref<8x128xf32, #tpu.memory_space<vmem>>, vector<8x128xf32>,
    } else {
    }
    return
  }
  func.func @transform_0(%arg0: i32, %arg1: i32, %arg2: i32) -> (i32, i32) {
    %c1_i32 = arith.constant 1 : i32
    %0 = arith.muli %arg0, %c1_i32 : i32
    %1 = arith.addi %0, %arg2 : i32
    %c0_i32 = arith.constant 0 : i32
    return %1, %arg1 : i32, i32
  }
  func.func @transform_1(%arg0: i32, %arg1: i32, %arg2: i32) -> (i32, i32) {
    %c0_i32 = arith.constant 0 : i32
    %c0_i32_0 = arith.constant 0 : i32
    return %c0_i32, %arg1 : i32, i32
  }
  func.func @transform_2(%arg0: i32, %arg1: i32, %arg2: i32) -> i32 {
    %c0_i32 = arith.constant 0 : i32
    %c0_i32_0 = arith.constant 0 : i32
    return %c0_i32 : i32
  }
  func.func @transform_3(%arg0: i32, %arg1: i32, %arg2: i32) -> (i32, i32) {
    %c0_i32 = arith.constant 0 : i32
    %c0_i32_0 = arith.constant 0 : i32
    return %arg0, %c0_i32 : i32, i32
  }
}

</mosaic_0001>

<bundles_post_ra>
// kernel: tpu_custom_call.1
= control target key start
LH: loop header
LB: loop body
LE: loop exit
PB: predicated region body
PF: predicated region fallthrough
CT: control target
= control target key end

     0   :  { %9 = vsyncpa [#allocation6], 0  ;;  %s422_s0 = inlined_call_operand.hbm [shape: f32[2,1024], index: 0, kind: input, shape index: {}]   ;;  %s423_s1 = inlined_call_operand.hbm [shape: f32[1,1024], index: 1, kind: input, shape index: {}]   ;;  %s424_s2 = inlined_call_operand.<no memory space> [shape: f32[1], index: 2, kind: input, shape index: {}]   ;;  %s425_s3 = inlined_call_operand.hbm [shape: f32[8,128], index: 3, kind: output, shape index: {}]  }
   0x1   :  { %10 = vsyncpa [#allocation9], 0 }
   0x2   :  { %11 = vsyncpa [#allocation7], 0  ;;  %s332_s12 = smov [#allocation5]   ;;  %s333_s14 = smov [#allocation8]  }
   0x3   :  { %s22_s13 = sshll.u32 %s332_s12, 4  ;;  %s32_s15 = sshll.u32 %s333_s14, 4  ;;  %s23_s13 = int_to_ptr.vmem [resolvable:$true] %s22_s13  ;;  %s33_s15 = int_to_ptr.vmem [resolvable:$true] %s32_s15 }
   0x4   :  { %s260_s18 = scalar_lea.hbm %s422_s0, 256 }
   0x5   :  { %p261_p0 = scmp.ne.s32.totalorder %s422_s0, %s260_s18  ;;  %p264_p1 = scmp.lt.u32.totalorder %s260_s18, %s422_s0 }
   0x7   :  { %p266_p2 = pnand %p264_p1, %p261_p0 }
   0x9   :  { %269 = shalt.err (!%p266_p2)
}
   0xa   :  { %s270_s23 = scalar_lea.vmem %s23_s13, 256  ;;  %p275_p4 = scmp.lt.s32.totalorder %s23_s13, %s23_s13 }
   0xb   :  { %p271_p3 = scmp.ne.s32.totalorder %s23_s13, %s270_s23  ;;  %p276_p5 = scmp.lt.s32.totalorder %s270_s23, %s270_s23 }
   0xd   :  { %p277_p6 = por %p276_p5, %p275_p4 }
   0xf   :  { %p278_p7 = pnand %p277_p6, %p271_p3 }
  0x11   :  { %281 = shalt.err (!%p278_p7)
}
  0x12   :  { %25 = dma.hbm_to_vmem [thread:$0]  %s422_s0, 256, %s23_s13, [#allocation6]  }
  0x13   :  { %s282_s28 = scalar_lea.hbm %s423_s1, 128 }
  0x14   :  { %p283_p8 = scmp.ne.s32.totalorder %s423_s1, %s282_s28  ;;  %p286_p9 = scmp.lt.u32.totalorder %s282_s28, %s423_s1 }
  0x16   :  { %p288_p10 = pnand %p286_p9, %p283_p8 }
  0x18   :  { %291 = shalt.err (!%p288_p10)
}
  0x19   :  { %s292_s6 = scalar_lea.vmem %s33_s15, 128  ;;  %p297_p12 = scmp.lt.s32.totalorder %s33_s15, %s33_s15 }
  0x1a   :  { %p293_p11 = scmp.ne.s32.totalorder %s33_s15, %s292_s6  ;;  %p298_p13 = scmp.lt.s32.totalorder %s292_s6, %s292_s6 }
  0x1c   :  { %p299_p0 = por %p298_p13, %p297_p12 }
  0x1e   :  { %p300_p1 = pnand %p299_p0, %p293_p11 }
  0x20   :  { %303 = shalt.err (!%p300_p1)
}
  0x21   :  { %35 = dma.hbm_to_vmem [thread:$0]  %s423_s1, 128, %s33_s15, [#allocation9]  }
  0x22   :  { %326 = dma.done.wait [#allocation6], 256  }
  0x23   :  { %327 = vsyncadd [#allocation6], 4294967040 }
  0x24   :  { %328 = dma.done.wait [#allocation9], 128  }
  0x25   :  { %329 = vsyncadd [#allocation9], 4294967168  ;;  %v73_v0 = vlaneseq  ;;  %v334_v1 = vmov 1983009808   ;;  %v69_v13 = vld [vmem:[#allocation8] sm:$0xff]  ;;  %v58_v29 = vld [vmem:[#allocation5] sm:$0xff] }
  0x26   :  { %v108_v2 = vunpack.c.l.s4 %v334_v1  ;;  %v59_v32 = vld [vmem:[#allocation5 + $0x8] sm:$0xff]  ;;  %vm188_vm0 = vcmask 1041408   ;;  %vm51_vm1 = vcmask 0   ;;  %v335_v62 = vmov 0.0   ;;  %s337_s10 = smov [#allocation10]  }
  0x27   :  { %v382_v3 = vshrl.u32 %v73_v0, 7  ;;  %52 = vst.msk [vmem:[#allocation3] sm:$0x1] %vm51_vm1, %v335_v62  ;;  %v336_v63 = vmov 0   ;;  %s241_s11 = sshll.u32 %s337_s10, 4  ;;  %s242_s11 = int_to_ptr.vmem [resolvable:$true] %s241_s11 }
  0x28   :  { %v109_v4 = vunpack.c.0.s8 %v108_v2  ;;  %259 = vset.pattern.permute.xlu0 %v336_v63  ;;  %s304_s12 = scalar_lea.vmem %s242_s11, 128  ;;  %p309_p3 = scmp.lt.s32.totalorder %s242_s11, %s242_s11 }
  0x29   :  { %v75_v5 = vsub.s32 0, %v382_v3  ;;  %v79_v6 = vsub.s32 1, %v382_v3  ;;  %v83_v7 = vsub.s32 2, %v382_v3  ;;  %v87_v8 = vsub.s32 3, %v382_v3  ;;  %p305_p2 = scmp.ne.s32.totalorder %s242_s11, %s304_s12  ;;  %p310_p4 = scmp.lt.s32.totalorder %s304_s12, %s304_s12 }
  0x2a   :  { %v91_v9 = vsub.s32 4, %v382_v3  ;;  %v95_v10 = vsub.s32 5, %v382_v3  ;;  %v99_v11 = vsub.s32 6, %v382_v3  ;;  %v103_v12 = vsub.s32 7, %v382_v3 }
  0x2b   :  { %v112_v14 = vsub.s32 %v109_v4, %v382_v3  ;;  %v76_v15 = vrot.slane %v69_v13, %v75_v5  ;;  %v80_v16 = vrot.slane %v69_v13, %v79_v6  ;;  %v84_v17 = vrot.slane %v69_v13, %v83_v7  ;;  %p311_p5 = por %p310_p4, %p309_p3 }
  0x2c   :  { %v88_v18 = vrot.slane %v69_v13, %v87_v8  ;;  %v92_v19 = vrot.slane %v69_v13, %v91_v9  ;;  %v96_v20 = vrot.slane %v69_v13, %v95_v10  ;;  %v100_v21 = vrot.slane %v69_v13, %v99_v11 }
  0x2d   :  { %v104_v22 = vrot.slane %v69_v13, %v103_v12  ;;  %v105_v23 = vcombine.low %v76_v15, %v80_v16  ;;  %p312_p6 = pnand %p311_p5, %p305_p2 }
  0x2e   :  { %v106_v24 = vcombine.low %v84_v17, %v88_v18  ;;  %v122_v25 = vcombine.low %v92_v19, %v96_v20  ;;  %v143_v9 = vld [vmem:[#allocation3] sm:$0x1] }
  0x2f   :  { %v123_v26 = vcombine.low %v100_v21, %v104_v22  ;;  %v113_v27 = vrot.slane %v105_v23, %v112_v14 }
  0x30   :  { %v120_v28 = vrot.slane %v106_v24, %v112_v14  ;;  %v130_v30 = vrot.slane %v122_v25, %v112_v14 }
  0x31   :  { %v137_v31 = vrot.slane %v123_v26, %v112_v14 }
  0x32   :  { %v121_v33 = vcombine.low %v113_v27, %v120_v28 }
  0x33   :  { %v138_v34 = vcombine.low %v130_v30, %v137_v31 }
  0x34   :  { %v141_v35 = vmul.f32 %v121_v33, %v58_v29 }
  0x35   :  { %v142_v36 = vmul.f32 %v138_v34, %v59_v32 }
  0x36   :  { %v146_v37 = vcombine.high %v141_v35, %v141_v35  ;;  %v153_v38 = vrot.slane %v141_v35, %v112_v14 }
  0x37   :  { %v163_v39 = vcombine.high %v142_v36, %v142_v36  ;;  %v170_v42 = vrot.slane %v142_v36, %v112_v14 }
  0x38   :  { %v160_v40 = vrot.slane %v146_v37, %v112_v14  ;;  %v161_v41 = vcombine.high %v153_v38, %v153_v38  ;;  %v189_v43 = vsel %vm188_vm0, %v153_v38, 0.0 }
  0x39   :  { %v177_v48 = vrot.slane %v163_v39, %v112_v14  ;;  %v178_v49 = vcombine.high %v170_v42, %v170_v42  ;;  %v196_v52 = vsel %vm188_vm0, %v170_v42, 0.0  ;;  %v223_v14 = vstv %s424_s2 }
  0x3a   :  { %v162_v44 = vcombine.high %v160_v40, %v160_v40  ;;  %v190_v45 = vsel %vm188_vm0, %v161_v41, 0.0  ;;  %v192_v46 = vsel %vm188_vm0, %v160_v40, 0.0 }
  0x3b   :  { %v191_v47 = vadd.f32 %v190_v45, %v189_v43  ;;  %v179_v54 = vcombine.high %v177_v48, %v177_v48  ;;  %v198_v55 = vsel %vm188_vm0, %v178_v49, 0.0  ;;  %v200_v57 = vsel %vm188_vm0, %v177_v48, 0.0 }
  0x3c   :  { %v194_v50 = vsel %vm188_vm0, %v162_v44, 0.0 }
  0x3d   :  { %v193_v51 = vadd.f32 %v192_v46, %v191_v47  ;;  %v202_v59 = vsel %vm188_vm0, %v179_v54, 0.0 }
  0x3f   :  { %v195_v53 = vadd.f32 %v194_v50, %v193_v51 }
  0x41   :  { %v197_v56 = vadd.f32 %v196_v52, %v195_v53 }
  0x43   :  { %v199_v58 = vadd.f32 %v198_v55, %v197_v56 }
  0x45   :  { %v201_v60 = vadd.f32 %v200_v57, %v199_v58 }
  0x47   :  { %v203_v61 = vadd.f32 %v202_v59, %v201_v60 }
  0x49   :  { %204 = vadd.xlane.f32.xlu0 %v203_v61 }
  0xd6   :  { %v205_v0 = vpop.xlane.xlu0 %204 }
  0xd7   :  { %v206_v1 = vrot.slane %v205_v0, 4 }
  0xd9   :  { %v207_v2 = vadd.f32 %v206_v1, %v205_v0 }
  0xdb   :  { %v208_v4 = vrot.slane %v207_v2, 2 }
  0xdd   :  { %v209_v6 = vadd.f32 %v208_v4, %v207_v2 }
  0xdf   :  { %v210_v7 = vrot.slane %v209_v6, 1 }
  0xe1   :  { %v211_v8 = vadd.f32 %v210_v7, %v209_v6 }
  0xe3   :  { %251 = vpush %v211_v8 }
 0x114   :  { %s252_s1 = spop %251 }
 0x115   :  { %v213_v10 = vstv %s252_s1 }
 0x116   :  { %v214_v11 = vadd.f32 %v213_v10, %v143_v9 }
 0x118   :  { %216 = vst.msk [vmem:[#allocation3] sm:$0x1] %vm51_vm1, %v214_v11 }
 0x11f   :  { %v219_v12 = vld [vmem:[#allocation3] sm:$0x1] }
 0x120   :  { %v220_v13 = vmul.f32 0.5, %v219_v12 }
 0x122   :  { %v221_v15 = vsub.f32 0.0, %v220_v13 }
 0x124   :  { %v224_v16 = vsub.f32 %v221_v15, %v223_v14 }
 0x126   :  { %v229_v17 = vrot.slane %v224_v16, %v75_v5 }
 0x128   :  { %231 = vperm.xlu0 %259, %v229_v17  }
 0x1a7   :  { %v232_v18 = vpop.permute.xlu0 %231 }
 0x1a8   :  { %234 = vst [vmem:[#allocation10] sm:$0xff] %v232_v18 }
 0x1a9   :  { %315 = shalt.err (!%p312_p6)
}
 0x1aa   :  { %s316_s14 = scalar_lea.hbm %s425_s3, 128 }
 0x1ab   :  { %p317_p7 = scmp.ne.s32.totalorder %s425_s3, %s316_s14  ;;  %p320_p8 = scmp.lt.u32.totalorder %s316_s14, %s425_s3 }
 0x1ad   :  { %p322_p9 = pnand %p320_p8, %p317_p7 }
 0x1af   :  { %325 = shalt.err (!%p322_p9)
}
 0x1b0   :  { %244 = dma.vmem_to_hbm [thread:$0]  %s242_s11, 128, %s425_s3, [#allocation7]  }
 0x1b1   :  { %330 = dma.done.wait [#allocation7], 128  }
 0x1b2   :  { %331 = vsyncadd [#allocation7], 4294967168 }
 0x1b3   :  { %248 = vsyncpa [#allocation6], 1 }
 0x1b4   :  { %249 = vsyncpa [#allocation9], 1 }
 0x1b5   :  { %250 = vsyncpa [#allocation7], 1 }

</bundles_post_ra>
